<compile_context>
chip_gen: v7x
topology: tpu7x:2x2x1
jax: 0.10.0
libtpu: 0.0.40
codegen_flags: <defaults>
</compile_context>

<pallas_src>
import jax
import jax.numpy as jnp
from jax.experimental import pallas as pl
from jax.experimental.pallas import tpu as pltpu

# Layer widths from the PyTorch module: latent -> 64 -> 128 -> 256.
H1, H2, OUT = 64, 128, 256
# Packed-bias layout: each bias starts at a 128-lane-aligned offset.
_B1_OFF, _B2_OFF, _B3_OFF = 0, 128, 256
_BIAS_PACKED = _B3_OFF + OUT  # 512


def decoder_kernel(x_ref, w1_ref, w2_ref, w3_ref, b_ref, out_ref):
    """One batch tile of the decoder forward.

    x_ref  : [TB, latent] f32   (batch-tiled activations)
    w*_ref : [in, out]    bf16  (VMEM-resident across the whole grid)
    b_ref  : [1, 512]     f32   (b1 @ 0:64, b2 @ 128:256, b3 @ 256:512)
    out_ref: [TB, 256]    f32   (lane-dense output)
    """
    b1 = b_ref[:, _B1_OFF:_B1_OFF + H1]
    b2 = b_ref[:, _B2_OFF:_B2_OFF + H2]
    b3 = b_ref[:, _B3_OFF:_B3_OFF + OUT]

    # bf16 MXU matmuls with f32 accumulation; elementwise ops stay f32.
    x = x_ref[...].astype(jnp.bfloat16)
    h = jnp.dot(x, w1_ref[...], preferred_element_type=jnp.float32) + b1
    h = jnp.maximum(h, 0.0)
    h = jnp.dot(h.astype(jnp.bfloat16), w2_ref[...],
                preferred_element_type=jnp.float32) + b2
    h = jnp.maximum(h, 0.0)
    h = jnp.dot(h.astype(jnp.bfloat16), w3_ref[...],
                preferred_element_type=jnp.float32) + b3
    out_ref[...] = jnp.maximum(h, 0.0).astype(out_ref.dtype)


def _round_up(n, m):
    return ((n + m - 1) // m) * m


def decoder_forward(x, params, *, tb=128):
    """Decoder forward: x [B, latent] f32 -> reconstruction [B, 256] f32."""
    B, latent = x.shape
    TB = min(tb, _round_up(B, 8))          # batch tile, multiple of 8 sublanes
    Bp = _round_up(B, TB)
    if Bp != B:
        x = jnp.pad(x, ((0, Bp - B), (0, 0)))
    grid = (Bp // TB,)

    w1, w2, w3 = params["w1"], params["w2"], params["w3"]
    b_packed = params["b_packed"]

    def act_spec(width):
        return pl.BlockSpec((TB, width), lambda i: (i, 0))

    def const_spec(a):
        # Same block for every grid step -> stays resident, no re-DMA.
        return pl.BlockSpec(a.shape, lambda i: (0, 0))

    out = pl.pallas_call(
        decoder_kernel,
        out_shape=jax.ShapeDtypeStruct((Bp, OUT), jnp.float32),
        grid=grid,
        in_specs=[
            act_spec(latent),
            const_spec(w1), const_spec(w2), const_spec(w3),
            const_spec(b_packed),
        ],
        out_specs=act_spec(OUT),
        compiler_params=pltpu.CompilerParams(
            dimension_semantics=("parallel",)),
    )(x, w1, w2, w3, b_packed)
    return out[:B]


def init_params(key, latent_size):
    """Deterministic PyTorch-like uniform fan-in init; weights stored bf16."""
    def linear(k, fan_in, fan_out):
        kw, kb = jax.random.split(k)
        bound = 1.0 / (fan_in ** 0.5)
        w = jax.random.uniform(kw, (fan_in, fan_out), jnp.float32, -bound, bound)
        b = jax.random.uniform(kb, (1, fan_out), jnp.float32, -bound, bound)
        return w, b

    k1, k2, k3 = jax.random.split(key, 3)
    w1, b1 = linear(k1, latent_size, H1)
    w2, b2 = linear(k2, H1, H2)
    w3, b3 = linear(k3, H2, OUT)

    # One lane-aligned bias array: [b1 | pad | b2 | b3] -> [1, 512].
    b_packed = jnp.concatenate(
        [b1, jnp.zeros((1, _B2_OFF - H1), jnp.float32), b2, b3], axis=1)
    assert b_packed.shape == (1, _BIAS_PACKED)

    return {
        "w1": w1.astype(jnp.bfloat16),
        "w2": w2.astype(jnp.bfloat16),
        "w3": w3.astype(jnp.bfloat16),
        "b_packed": b_packed,
    }


def reference_forward(x, p):
    """Pure-JAX reference mirroring the kernel's bf16/f32 mixed precision."""
    relu = lambda v: jnp.maximum(v, 0.0)
    b1 = p["b_packed"][:, _B1_OFF:_B1_OFF + H1]
    b2 = p["b_packed"][:, _B2_OFF:_B2_OFF + H2]
    b3 = p["b_packed"][:, _B3_OFF:_B3_OFF + OUT]
    h = relu(jnp.dot(x.astype(jnp.bfloat16), p["w1"],
                     preferred_element_type=jnp.float32) + b1)
    h = relu(jnp.dot(h.astype(jnp.bfloat16), p["w2"],
                     preferred_element_type=jnp.float32) + b2)
    return relu(jnp.dot(h.astype(jnp.bfloat16), p["w3"],
                        preferred_element_type=jnp.float32) + b3)


if __name__ == "__main__":
    LATENT = 32
    IMG_CHANNELS = 3   # stored by the torch module but unused in forward()
    B = 256            # batch; tiled with TB=128 -> grid=(2,)

    key = jax.random.PRNGKey(0)
    k_params, k_x = jax.random.split(key)
    params = init_params(k_params, LATENT)
    x = jax.random.normal(k_x, (B, LATENT), dtype=jnp.float32)

    recon = decoder_forward(x, params)
    jax.block_until_ready(recon)

    r_ref = reference_forward(x, params)
    assert recon.shape == (B, OUT)
    assert jnp.allclose(recon, r_ref, atol=1e-2, rtol=1e-2), \
        float(jnp.max(jnp.abs(recon - r_ref)))

    print("KERNEL_OK")
</pallas_src>

<mosaic_0001>
module attributes {stable_mosaic.version = 11 : i64} {
  func.func @decoder_kernel(%arg0: i32, %arg1: memref<128x32xf32, #tpu.memory_space<vmem>>, %arg2: memref<32x64xbf16, #tpu.memory_space<vmem>>, %arg3: memref<64x128xbf16, #tpu.memory_space<vmem>>, %arg4: memref<128x256xbf16, #tpu.memory_space<vmem>>, %arg5: memref<1x512xf32, #tpu.memory_space<vmem>>, %arg6: memref<128x256xf32, #tpu.memory_space<vmem>>) attributes {dimension_semantics = [#tpu.dimension_semantics<parallel>], iteration_bounds = array<i64: 2>, scalar_prefetch = 0 : i64, scratch_operands = 0 : i64, tpu.core_type = #tpu.core_type<tc>, window_params = [{transform_indices = @transform_0, window_bounds = array<i64: 128, 32>}, {pipeline_mode = #tpu.pipeline_mode<synchronous>, transform_indices = @transform_1, window_bounds = array<i64: 32, 64>}, {pipeline_mode = #tpu.pipeline_mode<synchronous>, transform_indices = @transform_2, window_bounds = array<i64: 64, 128>}, {pipeline_mode = #tpu.pipeline_mode<synchronous>, transform_indices = @transform_3, window_bounds = array<i64: 128, 256>}, {pipeline_mode = #tpu.pipeline_mode<synchronous>, transform_indices = @transform_4, window_bounds = array<i64: 1, 512>}, {transform_indices = @transform_5, window_bounds = array<i64: 128, 256>}]} {
    %c0 = arith.constant 0 : index
    %c0_0 = arith.constant 0 : index
    %0 = vector.load %arg5[%c0, %c0_0] : memref<1x512xf32, #tpu.memory_space<vmem>>, vector<1x64xf32>
    %c0_1 = arith.constant 0 : index
    %c128 = arith.constant 128 : index
    %1 = vector.load %arg5[%c0_1, %c128] : memref<1x512xf32, #tpu.memory_space<vmem>>, vector<1x128xf32>
    %c0_2 = arith.constant 0 : index
    %c256 = arith.constant 256 : index
    %2 = vector.load %arg5[%c0_2, %c256] : memref<1x512xf32, #tpu.memory_space<vmem>>, vector<1x256xf32>
    %c0_3 = arith.constant 0 : index
    %c0_4 = arith.constant 0 : index
    %3 = vector.load %arg1[%c0_3, %c0_4] : memref<128x32xf32, #tpu.memory_space<vmem>>, vector<128x32xf32>
    %4 = arith.truncf %3 : vector<128x32xf32> to vector<128x32xbf16>
    %c0_5 = arith.constant 0 : index
    %c0_6 = arith.constant 0 : index
    %5 = vector.load %arg2[%c0_5, %c0_6] : memref<32x64xbf16, #tpu.memory_space<vmem>>, vector<32x64xbf16>
    %cst = arith.constant dense<0.000000e+00> : vector<128x64xf32>
    %6 = tpu.matmul %4, %5, %cst {dimension_numbers = #tpu.dot_dimension_numbers<[1], [0], [0], [1], [0, 0, 1, 1], [], []>} : vector<128x32xbf16>, vector<32x64xbf16>, vector<128x64xf32> -> vector<128x64xf32>
    %7 = vector.broadcast %0 : vector<1x64xf32> to vector<128x64xf32>
    %8 = arith.addf %6, %7 : vector<128x64xf32>
    %cst_7 = arith.constant 0.000000e+00 : f32
    %9 = vector.broadcast %cst_7 : f32 to vector<128x64xf32>
    %10 = arith.maximumf %8, %9 : vector<128x64xf32>
    %11 = arith.truncf %10 : vector<128x64xf32> to vector<128x64xbf16>
    %c0_8 = arith.constant 0 : index
    %c0_9 = arith.constant 0 : index
    %12 = vector.load %arg3[%c0_8, %c0_9] : memref<64x128xbf16, #tpu.memory_space<vmem>>, vector<64x128xbf16>
    %cst_10 = arith.constant dense<0.000000e+00> : vector<128x128xf32>
    %13 = tpu.matmul %11, %12, %cst_10 {dimension_numbers = #tpu.dot_dimension_numbers<[1], [0], [0], [1], [0, 0, 1, 1], [], []>} : vector<128x64xbf16>, vector<64x128xbf16>, vector<128x128xf32> -> vector<128x128xf32>
    %14 = vector.broadcast %1 : vector<1x128xf32> to vector<128x128xf32>
    %15 = arith.addf %13, %14 : vector<128x128xf32>
    %cst_11 = arith.constant 0.000000e+00 : f32
    %16 = vector.broadcast %cst_11 : f32 to vector<128x128xf32>
    %17 = arith.maximumf %15, %16 : vector<128x128xf32>
    %18 = arith.truncf %17 : vector<128x128xf32> to vector<128x128xbf16>
    %c0_12 = arith.constant 0 : index
    %c0_13 = arith.constant 0 : index
    %19 = vector.load %arg4[%c0_12, %c0_13] : memref<128x256xbf16, #tpu.memory_space<vmem>>, vector<128x256xbf16>
    %cst_14 = arith.constant dense<0.000000e+00> : vector<128x256xf32>
    %20 = tpu.matmul %18, %19, %cst_14 {dimension_numbers = #tpu.dot_dimension_numbers<[1], [0], [0], [1], [0, 0, 1, 1], [], []>} : vector<128x128xbf16>, vector<128x256xbf16>, vector<128x256xf32> -> vector<128x256xf32>
    %21 = vector.broadcast %2 : vector<1x256xf32> to vector<128x256xf32>
    %22 = arith.addf %20, %21 : vector<128x256xf32>
    %cst_15 = arith.constant 0.000000e+00 : f32
    %23 = vector.broadcast %cst_15 : f32 to vector<128x256xf32>
    %24 = arith.maximumf %22, %23 : vector<128x256xf32>
    %c0_16 = arith.constant 0 : index
    %c0_17 = arith.constant 0 : index
    %25 = vector.load %arg6[%c0_16, %c0_17] : memref<128x256xf32, #tpu.memory_space<vmem>>, vector<128x256xf32>
    tpu.vector_store %arg6[%c0_16, %c0_17], %24 {strides = array<i32>} : memref<128x256xf32, #tpu.memory_space<vmem>>, vector<128x256xf32>,
    return
  }
  func.func @transform_0(%arg0: i32) -> (i32, i32) {
    %c0_i32 = arith.constant 0 : i32
    %c0_i32_0 = arith.constant 0 : i32
    return %arg0, %c0_i32 : i32, i32
  }
  func.func @transform_1(%arg0: i32) -> (i32, i32) {
    %c0_i32 = arith.constant 0 : i32
    %c0_i32_0 = arith.constant 0 : i32
    %c0_i32_1 = arith.constant 0 : i32
    return %c0_i32, %c0_i32_0 : i32, i32
  }
  func.func @transform_2(%arg0: i32) -> (i32, i32) {
    %c0_i32 = arith.constant 0 : i32
    %c0_i32_0 = arith.constant 0 : i32
    %c0_i32_1 = arith.constant 0 : i32
    return %c0_i32, %c0_i32_0 : i32, i32
  }
  func.func @transform_3(%arg0: i32) -> (i32, i32) {
    %c0_i32 = arith.constant 0 : i32
    %c0_i32_0 = arith.constant 0 : i32
    %c0_i32_1 = arith.constant 0 : i32
    return %c0_i32, %c0_i32_0 : i32, i32
  }
  func.func @transform_4(%arg0: i32) -> (i32, i32) {
    %c0_i32 = arith.constant 0 : i32
    %c0_i32_0 = arith.constant 0 : i32
    %c0_i32_1 = arith.constant 0 : i32
    return %c0_i32, %c0_i32_0 : i32, i32
  }
  func.func @transform_5(%arg0: i32) -> (i32, i32) {
    %c0_i32 = arith.constant 0 : i32
    %c0_i32_0 = arith.constant 0 : i32
    return %arg0, %c0_i32 : i32, i32
  }
}

</mosaic_0001>

<bundles_post_ra>
// kernel: tpu_custom_call.1
= control target key start
LH: loop header
LB: loop body
LE: loop exit
PB: predicated region body
PF: predicated region fallthrough
CT: control target
= control target key end

     0   :  { %10 = vsyncpa [#allocation3], 0  ;;  %s1606_s0 = inlined_call_operand.vmem [shape: f32[256,32], index: 0, kind: input, shape index: {}]   ;;  %s1607_s1 = inlined_call_operand.vmem [shape: bf16[32,64], index: 1, kind: input, shape index: {}]   ;;  %s1608_s2 = inlined_call_operand.vmem [shape: bf16[64,128], index: 2, kind: input, shape index: {}]   ;;  %s1609_s3 = inlined_call_operand.vmem [shape: bf16[128,256], index: 3, kind: input, shape index: {}]   ;;  %s1610_s4 = inlined_call_operand.vmem [shape: f32[1,512], index: 4, kind: input, shape index: {}]   ;;  %s1611_s5 = inlined_call_operand.hbm [shape: f32[256,256], index: 5, kind: output, shape index: {}]  }
   0x1   :  { %12 = vsyncpa [#allocation3 + $0x1], 0  ;;  %s1274_s18 = smov 0   ;;  %s1276_s19 = smov 0  }
   0x2   :  { %s1278_s20 = smov 0   ;;  %s1280_s21 = smov 0  }
   0x3 LB: > { %s1295_s22 = sadd.s32 4294967295, %s1238_s21   ;;  %s967_s23 = sadd.s32 4294967294, %s1238_s21   ;;  %s1238_s21 = sphi %s1280_s21, %s1617_s21   ;;  %s1234_s20 = sphi %s1278_s20, %s1616_s20   ;;  %s1230_s19 = sphi %s1276_s19, %s1615_s19   ;;  %s1226_s18 = sphi %s1274_s18, %s1614_s18  }
   0x4   : > { %s1299_s24 = sadd.s32 1, %s1238_s21   ;;  %s135_s25 = sadd.s32 1, %s1234_s20 }
   0x5   : > { %s132_s26 = ssub.s32 %s1238_s21, %s1299_s24  ;;  %p145_p0 = scmp.ne.s32.totalorder %s1234_s20, %s1230_s19 }
   0x6   : > { %p133_p1 = scmp.eq.s32.totalorder %s132_s26, 0  ;;  %p146_p2 = scmp.eq.s32.totalorder %s1295_s22, 1 }
   0x7   : > { %p151_p3 = scmp.ne.s32.totalorder %s1230_s19, %s1226_s18  ;;  %p152_p4 = scmp.eq.s32.totalorder %s967_s23, 1 }
   0x8   : > { %s1310_s27 = scalar_select %p133_p1, %s1234_s20, %s135_s25  }
   0x9   : > { %p1312_p5 = por %p146_p2, %p145_p0  ;;  %p1316_p6 = por %p152_p4, %p151_p3 }
   0xa   : > { %p970_p7 = scmp.ge.s32.totalorder %s1238_s21, 1  ;;  %p191_p8 = scmp.lt.s32.totalorder %s1238_s21, 3 }
   0xc   : > { %p192_p9 = pnand %p970_p7, %p191_p8 }
   0xd   : > { %v1146_v0 = vld [vmem:[%s1607_s1] sm:$0xff] (!%p192_p9)   ;;  %s972_s7 = sshll.u32 (!%p192_p9), %s1295_s22, 4  ;;  %v1147_v1 = vld [vmem:[%s1607_s1 + $0x8] sm:$0xff] (!%p192_p9)   ;;  %vm276_vm0 = vcmask (!%p192_p9), 261120   ;;  %v1150_v28 = vld [vmem:[%s1608_s2 + $0x10] sm:$0xff] (!%p192_p9)   ;;  %vm460_vm1 = vcmask (!%p192_p9), 523264  }
   0xe   : > { %195 = sbr.rel (%p192_p9) target bundleno = 737 (0x2e1), region = 40  ;;  %p220_p10 = scmp.lt.s32.totalorder (!%p192_p9), %s972_s7, 31  ;;  %1044 = vmatprep.subr.bf16.mxu0 (!%p192_p9), %v1146_v0  ;;  %v1148_v2 = vld [vmem:[%s1608_s2] sm:$0xff] (!%p192_p9)   ;;  %v1149_v3 = vld [vmem:[%s1608_s2 + $0x8] sm:$0xff] (!%p192_p9)   ;;  %v1151_v29 = vld [vmem:[%s1608_s2 + $0x18] sm:$0xff] (!%p192_p9)  }
   0xf   : > { %1045 = vmatpush3.bf16.msra.mxu0 (!%p192_p9), %v1146_v0  ;;  %1064 = vmatprep.subr.bf16.mxu1 (!%p192_p9), %v1148_v2  ;;  %v1152_v30 = vld [vmem:[%s1609_s3] ss:$8 sps:$4 sm:$0xff] (!%p192_p9)   ;;  %v1154_v31 = vld [vmem:[%s1609_s3 + $0x4] ss:$8 sps:$4 sm:$0xff] (!%p192_p9)   ;;  %v1157_v32 = vld [vmem:[%s1609_s3 + $0x14] ss:$8 sps:$4 sm:$0xff] (!%p192_p9)  }
  0x10   : > { %1046 = vmatprep.subr.bf16.mxu0 (!%p192_p9), %v1147_v1  ;;  %1065 = vmatpush3.bf16.msra.mxu1 (!%p192_p9), %v1148_v2  ;;  %v1155_v33 = vld [vmem:[%s1609_s3 + $0x10] ss:$8 sps:$4 sm:$0xff] (!%p192_p9)   ;;  %v1160_v34 = vld [vmem:[%s1609_s3 + $0x24] ss:$8 sps:$4 sm:$0xff] (!%p192_p9)   ;;  %v1158_v35 = vld [vmem:[%s1609_s3 + $0x20] ss:$8 sps:$4 sm:$0xff] (!%p192_p9)  }
  0x11   : > { %1066 = vmatprep.subr.bf16.mxu1 (!%p192_p9), %v1149_v3  ;;  %v1163_v36 = vld [vmem:[%s1609_s3 + $0x34] ss:$8 sps:$4 sm:$0xff] (!%p192_p9)   ;;  %v1394_v37 = vld [vmem:[%s1609_s3 + $0x30] ss:$8 sps:$4 sm:$0xff] (!%p192_p9)   ;;  %v1399_v38 = vld [vmem:[%s1609_s3 + $0x44] ss:$8 sps:$4 sm:$0xff] (!%p192_p9)  }
  0x12   : > { %v1405_v39 = vld [vmem:[%s1609_s3 + $0x40] ss:$8 sps:$4 sm:$0xff] (!%p192_p9)   ;;  %v1411_v40 = vld [vmem:[%s1609_s3 + $0x54] ss:$8 sps:$4 sm:$0xff] (!%p192_p9)   ;;  %v1417_v41 = vld [vmem:[%s1609_s3 + $0x50] ss:$8 sps:$4 sm:$0xff] (!%p192_p9)  }
  0x13   : > { %1047 = vmatpush3.bf16.msra.mxu0 (!%p192_p9), %v1147_v1  ;;  %v1424_v42 = vld [vmem:[%s1610_s4] ss:$0 sm:$0xff] (!%p192_p9)  ;;  %s216_s12 = sand.u32 (!%p192_p9), 1, %s1230_s19   ;;  %s1021_s15 = sshll.u32 (!%p192_p9), %s1295_s22, 12 }
  0x14   : > { %1067 = vmatpush3.bf16.msra.mxu1 (!%p192_p9), %v1149_v3  ;;  %713 = vmatprep.subr.bf16.mxu0 (!%p192_p9), %v1154_v31  ;;  %s971_s13 = sshll.u32 (!%p192_p9), %s216_s12, 8  ;;  %s1553_s23 = scalar_lea.hbm (!%p192_p9), %s1611_s5, %s1021_s15 }
  0x15   : > { %s1619_s7 = smov (!%p220_p10, %s972_s7), 31  ;;  %1068 = vmatprep.subr.bf16.mxu1 %v1150_v28  ;;  %s1565_s25 = scalar_lea.sflag [#allocation3], %s216_s12 }
  0x16   : > { %s973_s14 = sshll.u32 %s1619_s7, 3  ;;  %s1241_s30 = smov [#allocation2]  }
  0x17   : > { %s1338_s17 = scalar_lea.vmem %s1606_s0, %s973_s14  ;;  %s1492_s14 = scalar_lea.vmem [#allocation2], %s971_s13 }
  0x18   : > { %v230_v4 = vld [vmem:[%s1338_s17] sm:$0xff]  ;;  %v231_v5 = vld [vmem:[%s1338_s17 + $0x8] sm:$0xff]  ;;  %v232_v6 = vld [vmem:[%s1338_s17 + $0x10] sm:$0xff]  ;;  %1069 = vmatpush3.bf16.msra.mxu1 %v1150_v28  ;;  %s905_s16 = sshll.u32 %s1492_s14, 4  ;;  %s1180_s6 = sshll.u32 %s1241_s30, 4  ;;  %s1555_s16 = int_to_ptr.vmem [resolvable:$true] %s905_s16  ;;  %s1181_s6 = int_to_ptr.vmem [resolvable:$false] %s1180_s6 }
  0x19   : > { %v246_v7 = vpack.c.bf16 %v231_v5, %v230_v4  ;;  %v233_v8 = vld [vmem:[%s1338_s17 + $0x18] sm:$0xff]  ;;  %v234_v9 = vld [vmem:[%s1338_s17 + $0x20] sm:$0xff]  ;;  %v235_v10 = vld [vmem:[%s1338_s17 + $0x28] sm:$0xff]  ;;  %1070 = vmatprep.subr.bf16.mxu1 %v1151_v29  ;;  %s1176_s26 = scalar_lea.vmem %s1555_s16, 4096  ;;  %s1182_s7 = scalar_lea.vmem %s1181_s6, 8192 }
  0x1a   : > { %v247_v11 = vpack.c.bf16 %v233_v8, %v232_v6  ;;  %v248_v12 = vpack.c.bf16 %v235_v10, %v234_v9  ;;  %v236_v13 = vld [vmem:[%s1338_s17 + $0x30] sm:$0xff]  ;;  %v237_v14 = vld [vmem:[%s1338_s17 + $0x38] sm:$0xff]  ;;  %v238_v15 = vld [vmem:[%s1338_s17 + $0x40] sm:$0xff]  ;;  %p1177_p11 = scmp.ne.s32.totalorder %s1555_s16, %s1176_s26  ;;  %p1183_p0 = scmp.lt.s32.totalorder %s1555_s16, %s1181_s6 }
  0x1b   : > { %1048 = vmatprep.mubr.msk.bf16.mxu0 %vm276_vm0, %v246_v7  ;;  %v239_v16 = vld [vmem:[%s1338_s17 + $0x48] sm:$0xff]  ;;  %v249_v17 = vpack.c.bf16 %v237_v14, %v236_v13  ;;  %v240_v19 = vld [vmem:[%s1338_s17 + $0x50] sm:$0xff]  ;;  %v241_v20 = vld [vmem:[%s1338_s17 + $0x58] sm:$0xff]  ;;  %p1184_p1 = scmp.lt.s32.totalorder %s1182_s7, %s1176_s26 }
  0x1c   : > { %1049 = vmatmul.mubr.msk.bf16.vlgmr.msra.gmra.mrb[0].mxu0 %vm276_vm0, %v247_v11  ;;  %v250_v18 = vpack.c.bf16 %v239_v16, %v238_v15  ;;  %v242_v21 = vld [vmem:[%s1338_s17 + $0x60] sm:$0xff]  ;;  %v243_v22 = vld [vmem:[%s1338_s17 + $0x68] sm:$0xff]  ;;  %v251_v23 = vpack.c.bf16 %v241_v20, %v240_v19  ;;  %v244_v25 = vld [vmem:[%s1338_s17 + $0x70] sm:$0xff]  ;;  %1071 = vmatpush3.bf16.msra.mxu1 %v1151_v29  ;;  %p1178_p12 = pnand %p1177_p11, %p1312_p5 }
  0x1d   : > { %1052 = vmatprep.mubr.msk.bf16.mxu0 %vm276_vm0, %v248_v12  ;;  %v252_v24 = vpack.c.bf16 %v243_v22, %v242_v21  ;;  %v245_v26 = vld [vmem:[%s1338_s17 + $0x78] sm:$0xff]  ;;  %1088 = vmatprep.subr.bf16.mxu1 %v1154_v31  ;;  %p1185_p2 = por %p1184_p1, %p1183_p0 }
  0x1e   : > { %v253_v27 = vpack.c.bf16 %v245_v26, %v244_v25  ;;  %714 = vmatpush1.bf16.msra.mxu0 %v1152_v30  ;;  %p1179_p13 = pneg %p1178_p12 }
  0x1f   : > { %715 = vmatprep.subr.bf16.mxu0 %v1157_v32 }
  0x20   : > { %p1186_p3 = pnand %p1185_p2, %p1179_p13 }
  0x22   : > { %716 = vmatpush1.bf16.msra.mxu0 %v1155_v33 }
  0x23   : > { %717 = vmatprep.subr.bf16.mxu0 %v1160_v34 }
  0x24   : > { %1053 = vmatmul.mubr.msk.bf16.gmra.mrb[4].mxu0 %vm276_vm0, %v249_v17 }
  0x25   : > { %1056 = vmatprep.mubr.msk.bf16.mxu0 %vm276_vm0, %v250_v18 }
  0x26   : > { %718 = vmatpush1.bf16.msra.mxu0 %v1158_v35 }
  0x27   : > { %719 = vmatprep.subr.bf16.mxu0 %v1163_v36 }
  0x2a   : > { %720 = vmatpush1.bf16.msra.mxu0 %v1394_v37 }
  0x2b   : > { %721 = vmatprep.subr.bf16.mxu0 %v1399_v38 }
  0x2c   : > { %1057 = vmatmul.mubr.msk.bf16.gmra.mrb[8].mxu0 %vm276_vm0, %v251_v23 }
  0x2d   : > { %1060 = vmatprep.mubr.msk.bf16.mxu0 %vm276_vm0, %v252_v24 }
  0x2e   : > { %722 = vmatpush1.bf16.msra.mxu0 %v1405_v39 }
  0x2f   : > { %723 = vmatprep.subr.bf16.mxu0 %v1411_v40 }
  0x32   : > { %724 = vmatpush1.bf16.msra.mxu0 %v1417_v41 }
  0x34   : > { %1061 = vmatmul.mubr.msk.bf16.gmra.mrb[12].mxu0 %vm276_vm0, %v253_v27 }
  0xef   : > { %v1050_v43 = vpop.f32.mrb[0].mxu0 }
  0xf0   : > { %v344_v44 = vadd.f32 %v1050_v43, %v1424_v42  ;;  %v335_v45 = vpop.f32.mrb[1].mxu0 }
  0xf1   : > { %v336_v46 = vadd.f32 %v1424_v42, %v335_v45  ;;  %v1051_v47 = vpop.f32.mrb[2].mxu0 }
  0xf2   : > { %v347_v48 = vadd.f32 %v1051_v47, %v1424_v42  ;;  %v338_v49 = vpop.f32.mrb[3].mxu0  ;;  %v400_v51 = vmax.f32 %v344_v44, 0.0 }
  0xf3   : > { %v339_v50 = vadd.f32 %v1424_v42, %v338_v49  ;;  %v398_v53 = vmax.f32 %v336_v46, 0.0 }
  0xf4   : > { %v401_v52 = vmax.f32 %v347_v48, 0.0 }
  0xf5   : > { %v399_v54 = vmax.f32 %v339_v50, 0.0 }
  0xf6   : > { %v415_v55 = vpack.c.bf16 %v401_v52, %v400_v51 }
  0xf7   : > { %v1054_v56 = vpop.f32.mrb[4].mxu0  ;;  %v414_v57 = vpack.c.bf16 %v399_v54, %v398_v53 }
  0xf8   : > { %v360_v58 = vadd.f32 %v1054_v56, %v1424_v42  ;;  %v351_v59 = vpop.f32.mrb[5].mxu0 }
  0xf9   : > { %v352_v60 = vadd.f32 %v1424_v42, %v351_v59  ;;  %v1055_v61 = vpop.f32.mrb[6].mxu0  ;;  %1072 = vmatprep.mubr.msk.bf16.mxu1 %vm460_vm1, %v414_v57 }
  0xfa   : > { %v363_v62 = vadd.f32 %v1055_v61, %v1424_v42  ;;  %v354_v63 = vpop.f32.mrb[7].mxu0  ;;  %1073 = vmatmul.mubr.msk.bf16.vlgmr.msra.gmra.mrb[0].mxu1 %vm460_vm1, %v415_v55  ;;  %v404_v1 = vmax.f32 %v360_v58, 0.0 }
  0xfb   : > { %v355_v0 = vadd.f32 %v1424_v42, %v354_v63  ;;  %1096 = vmatpush1.bf16.msra.mxu1 %v1152_v30  ;;  %v402_v3 = vmax.f32 %v352_v60, 0.0 }
  0xfc   : > { %v405_v2 = vmax.f32 %v363_v62, 0.0  ;;  %1089 = vmatprep.subr.bf16.mxu1 %v1157_v32 }
  0xfd   : > { %v403_v4 = vmax.f32 %v355_v0, 0.0 }
  0xfe   : > { %v417_v5 = vpack.c.bf16 %v405_v2, %v404_v1 }
  0xff   : > { %v416_v6 = vpack.c.bf16 %v403_v4, %v402_v3  ;;  %v1058_v7 = vpop.f32.mrb[8].mxu0  ;;  %1097 = vmatpush1.bf16.msra.mxu1 %v1155_v33 }
 0x100   : > { %v376_v8 = vadd.f32 %v1058_v7, %v1424_v42  ;;  %v367_v9 = vpop.f32.mrb[9].mxu0  ;;  %1090 = vmatprep.subr.bf16.mxu1 %v1160_v34 }
 0x101   : > { %v368_v10 = vadd.f32 %v1424_v42, %v367_v9  ;;  %v1059_v11 = vpop.f32.mrb[10].mxu0  ;;  %1076 = vmatprep.mubr.msk.bf16.mxu1 %vm460_vm1, %v416_v6 }
 0x102   : > { %v379_v12 = vadd.f32 %v1059_v11, %v1424_v42  ;;  %v370_v13 = vpop.f32.mrb[11].mxu0  ;;  %1077 = vmatmul.mubr.msk.bf16.gmra.mrb[4].mxu1 %vm460_vm1, %v417_v5  ;;  %v408_v15 = vmax.f32 %v376_v8, 0.0 }
 0x103   : > { %v371_v14 = vadd.f32 %v1424_v42, %v370_v13  ;;  %1098 = vmatpush1.bf16.msra.mxu1 %v1158_v35  ;;  %v406_v17 = vmax.f32 %v368_v10, 0.0  ;;  %v1172_v35 = vld [vmem:[%s1609_s3 + $0x64] ss:$8 sps:$4 sm:$0xff]  }
 0x104   : > { %v409_v16 = vmax.f32 %v379_v12, 0.0  ;;  %1091 = vmatprep.subr.bf16.mxu1 %v1163_v36  ;;  %v1170_v36 = vld [vmem:[%s1609_s3 + $0x60] ss:$8 sps:$4 sm:$0xff]   ;;  %725 = vmatprep.subr.bf16.mxu0 %v1172_v35 }
 0x105   : > { %v407_v18 = vmax.f32 %v371_v14, 0.0  ;;  %726 = vmatpush1.bf16.msra.mxu0 %v1170_v36 }
 0x106   : > { %v419_v19 = vpack.c.bf16 %v409_v16, %v408_v15 }
 0x107   : > { %v418_v20 = vpack.c.bf16 %v407_v18, %v406_v17  ;;  %v1062_v21 = vpop.f32.mrb[12].mxu0  ;;  %1099 = vmatpush1.bf16.msra.mxu1 %v1394_v37  ;;  %v1175_v37 = vld [vmem:[%s1609_s3 + $0x74] ss:$8 sps:$4 sm:$0xff]  }
 0x108   : > { %v392_v22 = vadd.f32 %v1062_v21, %v1424_v42  ;;  %v383_v23 = vpop.f32.mrb[13].mxu0  ;;  %1092 = vmatprep.subr.bf16.mxu1 %v1399_v38  ;;  %v1173_v38 = vld [vmem:[%s1609_s3 + $0x70] ss:$8 sps:$4 sm:$0xff]   ;;  %727 = vmatprep.subr.bf16.mxu0 %v1175_v37 }
 0x109   : > { %v384_v24 = vadd.f32 %v1424_v42, %v383_v23  ;;  %v1063_v25 = vpop.f32.mrb[14].mxu0  ;;  %1080 = vmatprep.mubr.msk.bf16.mxu1 %vm460_vm1, %v418_v20  ;;  %728 = vmatpush1.bf16.msra.mxu0 %v1173_v38 }
 0x10a   : > { %v395_v26 = vadd.f32 %v1063_v25, %v1424_v42  ;;  %v386_v27 = vpop.f32.mrb[15].mxu0  ;;  %1081 = vmatmul.mubr.msk.bf16.gmra.mrb[8].mxu1 %vm460_vm1, %v419_v19  ;;  %v412_v29 = vmax.f32 %v392_v22, 0.0 }
 0x10b   : > { %v387_v28 = vadd.f32 %v1424_v42, %v386_v27  ;;  %1100 = vmatpush1.bf16.msra.mxu1 %v1405_v39  ;;  %v410_v31 = vmax.f32 %v384_v24, 0.0  ;;  %v1240_v39 = vmov 0  }
 0x10c   : > { %v413_v30 = vmax.f32 %v395_v26, 0.0  ;;  %1093 = vmatprep.subr.bf16.mxu1 %v1411_v40  ;;  %745 = vmatprep.mubr.bf16.mxu0 %v1240_v39  ;;  %v985_v40 = vld [vmem:[%s1610_s4 + $0x1] ss:$0 sm:$0xff] }
 0x10d   : > { %v411_v32 = vmax.f32 %v387_v28, 0.0 }
 0x10e   : > { %v421_v33 = vpack.c.bf16 %v413_v30, %v412_v29 }
 0x10f   : > { %v420_v34 = vpack.c.bf16 %v411_v32, %v410_v31  ;;  %1101 = vmatpush1.bf16.msra.mxu1 %v1417_v41 }
 0x110   : > { %1094 = vmatprep.subr.bf16.mxu1 %v1172_v35 }
 0x111   : > { %1084 = vmatprep.mubr.msk.bf16.mxu1 %vm460_vm1, %v420_v34 }
 0x112   : > { %1085 = vmatmul.mubr.msk.bf16.gmra.mrb[12].mxu1 %vm460_vm1, %v421_v33  ;;  %v623_v33 = vlaneseq }
 0x113   : > { %1102 = vmatpush1.bf16.msra.mxu1 %v1170_v36  ;;  %795 = vmatprep.mubr.bf16.mxu1 %v1240_v39  ;;  %v229_v36 = vld [vmem:[%s1610_s4 + $0x2] sm:$0x3] }
 0x114   : > { %1095 = vmatprep.subr.bf16.mxu1 %v1175_v37  ;;  %v624_v34 = vshrl.u32 %v623_v33, 7 }
 0x116   : > { %v625_v35 = vsub.s32 0, %v624_v34  ;;  %v629_v37 = vsub.s32 1, %v624_v34 }
 0x117   : > { %1103 = vmatpush1.bf16.msra.mxu1 %v1173_v38 }
 0x118   : > { %v1482_v38 = vrot.slane %v229_v36, %v625_v35 }
 0x1cd   : > { %v1074_v41 = vpop.f32.mrb[0].mxu1 }
 0x1ce   : > { %v528_v42 = vadd.f32 %v1074_v41, %v985_v40  ;;  %v519_v43 = vpop.f32.mrb[1].mxu1 }
 0x1cf   : > { %v520_v44 = vadd.f32 %v985_v40, %v519_v43  ;;  %v1075_v45 = vpop.f32.mrb[2].mxu1 }
 0x1d0   : > { %v531_v46 = vadd.f32 %v1075_v45, %v985_v40  ;;  %v522_v47 = vpop.f32.mrb[3].mxu1  ;;  %v584_v49 = vmax.f32 %v528_v42, 0.0 }
 0x1d1   : > { %v523_v48 = vadd.f32 %v985_v40, %v522_v47  ;;  %v582_v51 = vmax.f32 %v520_v44, 0.0 }
 0x1d2   : > { %v585_v50 = vmax.f32 %v531_v46, 0.0 }
 0x1d3   : > { %v583_v52 = vmax.f32 %v523_v48, 0.0 }
 0x1d4   : > { %v599_v53 = vpack.c.bf16 %v585_v50, %v584_v49 }
 0x1d5   : > { %v598_v54 = vpack.c.bf16 %v583_v52, %v582_v51  ;;  %v1078_v55 = vpop.f32.mrb[4].mxu1 }
 0x1d6   : > { %v544_v56 = vadd.f32 %v1078_v55, %v985_v40  ;;  %v535_v57 = vpop.f32.mrb[5].mxu1 }
 0x1d7   : > { %v536_v58 = vadd.f32 %v985_v40, %v535_v57  ;;  %v1079_v59 = vpop.f32.mrb[6].mxu1  ;;  %746 = vmatmul.mubr.bf16.vlgmr.msra.gmra.mrb[16].mxu0 %v598_v54 }
 0x1d8   : > { %v547_v60 = vadd.f32 %v1079_v59, %v985_v40  ;;  %v538_v61 = vpop.f32.mrb[7].mxu1  ;;  %755 = vmatprep.mubr.bf16.mxu0 %v1240_v39  ;;  %v588_v63 = vmax.f32 %v544_v56, 0.0 }
 0x1d9   : > { %v539_v62 = vadd.f32 %v985_v40, %v538_v61  ;;  %v586_v1 = vmax.f32 %v536_v58, 0.0 }
 0x1da   : > { %v589_v0 = vmax.f32 %v547_v60, 0.0 }
 0x1db   : > { %v587_v2 = vmax.f32 %v539_v62, 0.0 }
 0x1dc   : > { %v601_v3 = vpack.c.bf16 %v589_v0, %v588_v63 }
 0x1dd   : > { %v600_v4 = vpack.c.bf16 %v587_v2, %v586_v1  ;;  %v1082_v5 = vpop.f32.mrb[8].mxu1 }
 0x1de   : > { %v560_v6 = vadd.f32 %v1082_v5, %v985_v40  ;;  %v551_v7 = vpop.f32.mrb[9].mxu1 }
 0x1df   : > { %v552_v8 = vadd.f32 %v985_v40, %v551_v7  ;;  %v1083_v9 = vpop.f32.mrb[10].mxu1  ;;  %756 = vmatmul.mubr.bf16.gmra.mrb[20].mxu0 %v599_v53 }
 0x1e0   : > { %v563_v10 = vadd.f32 %v1083_v9, %v985_v40  ;;  %v554_v11 = vpop.f32.mrb[11].mxu1  ;;  %765 = vmatprep.mubr.bf16.mxu0 %v1240_v39  ;;  %v592_v13 = vmax.f32 %v560_v6, 0.0 }
 0x1e1   : > { %v555_v12 = vadd.f32 %v985_v40, %v554_v11  ;;  %v590_v15 = vmax.f32 %v552_v8, 0.0 }
 0x1e2   : > { %v593_v14 = vmax.f32 %v563_v10, 0.0 }
 0x1e3   : > { %v591_v16 = vmax.f32 %v555_v12, 0.0 }
 0x1e4   : > { %v603_v17 = vpack.c.bf16 %v593_v14, %v592_v13 }
 0x1e5   : > { %v602_v18 = vpack.c.bf16 %v591_v16, %v590_v15  ;;  %v1086_v19 = vpop.f32.mrb[12].mxu1 }
 0x1e6   : > { %v576_v20 = vadd.f32 %v1086_v19, %v985_v40  ;;  %v567_v21 = vpop.f32.mrb[13].mxu1  ;;  %796 = vmatmul.mubr.bf16.vlgmr.msra.gmra.mrb[16].mxu1 %v603_v17 }
 0x1e7   : > { %v568_v22 = vadd.f32 %v985_v40, %v567_v21  ;;  %v1087_v23 = vpop.f32.mrb[14].mxu1  ;;  %766 = vmatmul.mubr.bf16.gmra.mrb[24].mxu0 %v600_v4  ;;  %805 = vmatprep.mubr.bf16.mxu1 %v1240_v39 }
 0x1e8   : > { %v579_v24 = vadd.f32 %v1087_v23, %v985_v40  ;;  %v570_v25 = vpop.f32.mrb[15].mxu1  ;;  %775 = vmatprep.mubr.bf16.mxu0 %v1240_v39  ;;  %v596_v27 = vmax.f32 %v576_v20, 0.0 }
 0x1e9   : > { %v571_v26 = vadd.f32 %v985_v40, %v570_v25  ;;  %v594_v29 = vmax.f32 %v568_v22, 0.0  ;;  %v1484_v40 = vrot.slane %v229_v36, %v629_v37 }
 0x1ea   : > { %v597_v28 = vmax.f32 %v579_v24, 0.0 }
 0x1eb   : > { %v595_v30 = vmax.f32 %v571_v26, 0.0 }
 0x1ec   : > { %v605_v31 = vpack.c.bf16 %v597_v28, %v596_v27 }
 0x1ed   : > { %v604_v32 = vpack.c.bf16 %v595_v30, %v594_v29 }
 0x1ef   : > { %776 = vmatmul.mubr.bf16.gmra.mrb[28].mxu0 %v601_v3  ;;  %806 = vmatmul.mubr.bf16.gmra.mrb[20].mxu1 %v604_v32 }
 0x1f0   : > { %785 = vmatprep.mubr.bf16.mxu0 %v1240_v39  ;;  %815 = vmatprep.mubr.bf16.mxu1 %v1240_v39 }
 0x1f7   : > { %786 = vmatmul.mubr.bf16.gmra.mrb[32].mxu0 %v602_v18  ;;  %816 = vmatmul.mubr.bf16.gmra.mrb[24].mxu1 %v605_v31 }
 0x2aa   : > { %v747_v41 = vpop.f32.mrb[16].mxu0 }
 0x2ab   : > { %v748_v39 = vadd.f32 %v747_v41, %v1482_v38  ;;  %v749_v42 = vpop.f32.mrb[17].mxu0 }
 0x2ac   : > { %v750_v43 = vadd.f32 %v749_v42, %v1484_v40  ;;  %v751_v44 = vpop.f32.mrb[18].mxu0 }
 0x2ad   : > { %v826_v45 = vmax.f32 %v748_v39, 0.0  ;;  %v752_v46 = vadd.f32 %v751_v44, %v1482_v38  ;;  %v753_v47 = vpop.f32.mrb[19].mxu0 }
 0x2ae   : > { %v827_v48 = vmax.f32 %v750_v43, 0.0  ;;  %v754_v49 = vadd.f32 %v753_v47, %v1484_v40 }
 0x2af   : > { %858 = vst [vmem:[%s1492_s14] sm:$0xff] %v826_v45  ;;  %v828_v50 = vmax.f32 %v752_v46, 0.0 }
 0x2b0   : > { %859 = vst [vmem:[%s1492_s14 + $0x8] sm:$0xff] %v827_v48  ;;  %v829_v51 = vmax.f32 %v754_v49, 0.0 }
 0x2b1   : > { %860 = vst [vmem:[%s1492_s14 + $0x10] sm:$0xff] %v828_v50 }
 0x2b2   : > { %861 = vst [vmem:[%s1492_s14 + $0x18] sm:$0xff] %v829_v51  ;;  %v757_v52 = vpop.f32.mrb[20].mxu0 }
 0x2b3   : > { %v758_v53 = vadd.f32 %v757_v52, %v1482_v38  ;;  %v759_v54 = vpop.f32.mrb[21].mxu0 }
 0x2b4   : > { %v760_v55 = vadd.f32 %v759_v54, %v1484_v40  ;;  %v761_v56 = vpop.f32.mrb[22].mxu0 }
 0x2b5   : > { %v830_v57 = vmax.f32 %v758_v53, 0.0  ;;  %v762_v58 = vadd.f32 %v761_v56, %v1482_v38  ;;  %v763_v59 = vpop.f32.mrb[23].mxu0 }
 0x2b6   : > { %v831_v60 = vmax.f32 %v760_v55, 0.0  ;;  %v764_v61 = vadd.f32 %v763_v59, %v1484_v40 }
 0x2b7   : > { %862 = vst [vmem:[%s1492_s14 + $0x20] sm:$0xff] %v830_v57  ;;  %v832_v62 = vmax.f32 %v762_v58, 0.0 }
 0x2b8   : > { %863 = vst [vmem:[%s1492_s14 + $0x28] sm:$0xff] %v831_v60  ;;  %v833_v63 = vmax.f32 %v764_v61, 0.0 }
 0x2b9   : > { %864 = vst [vmem:[%s1492_s14 + $0x30] sm:$0xff] %v832_v62  ;;  %v797_v0 = vpop.f32.mrb[16].mxu1 }
 0x2ba   : > { %865 = vst [vmem:[%s1492_s14 + $0x38] sm:$0xff] %v833_v63  ;;  %v798_v1 = vadd.f32 %v797_v0, %v1482_v38  ;;  %v767_v2 = vpop.f32.mrb[24].mxu0  ;;  %v799_v3 = vpop.f32.mrb[17].mxu1 }
 0x2bb   : > { %v768_v4 = vadd.f32 %v767_v2, %v1482_v38  ;;  %v800_v5 = vadd.f32 %v799_v3, %v1484_v40  ;;  %v769_v6 = vpop.f32.mrb[25].mxu0  ;;  %v801_v7 = vpop.f32.mrb[18].mxu1 }
 0x2bc   : > { %v846_v8 = vmax.f32 %v798_v1, 0.0  ;;  %v770_v9 = vadd.f32 %v769_v6, %v1484_v40  ;;  %v802_v10 = vadd.f32 %v801_v7, %v1482_v38  ;;  %v771_v11 = vpop.f32.mrb[26].mxu0  ;;  %v803_v12 = vpop.f32.mrb[19].mxu1 }
 0x2bd   : > { %v834_v13 = vmax.f32 %v768_v4, 0.0  ;;  %v847_v14 = vmax.f32 %v800_v5, 0.0  ;;  %v772_v15 = vadd.f32 %v771_v11, %v1482_v38  ;;  %v804_v16 = vadd.f32 %v803_v12, %v1484_v40  ;;  %v773_v17 = vpop.f32.mrb[27].mxu0 }
 0x2be   : > { %878 = vst [vmem:[%s1492_s14 + $0xa0] sm:$0xff] %v846_v8  ;;  %v835_v18 = vmax.f32 %v770_v9, 0.0  ;;  %v848_v19 = vmax.f32 %v802_v10, 0.0  ;;  %v774_v20 = vadd.f32 %v773_v17, %v1484_v40 }
 0x2bf   : > { %866 = vst [vmem:[%s1492_s14 + $0x40] sm:$0xff] %v834_v13  ;;  %879 = vst [vmem:[%s1492_s14 + $0xa8] sm:$0xff] %v847_v14  ;;  %v836_v21 = vmax.f32 %v772_v15, 0.0  ;;  %v849_v22 = vmax.f32 %v804_v16, 0.0 }
 0x2c0   : > { %867 = vst [vmem:[%s1492_s14 + $0x48] sm:$0xff] %v835_v18  ;;  %880 = vst [vmem:[%s1492_s14 + $0xb0] sm:$0xff] %v848_v19  ;;  %v837_v23 = vmax.f32 %v774_v20, 0.0 }
 0x2c1   : > { %868 = vst [vmem:[%s1492_s14 + $0x50] sm:$0xff] %v836_v21  ;;  %881 = vst [vmem:[%s1492_s14 + $0xb8] sm:$0xff] %v849_v22 }
 0x2c2   : > { %869 = vst [vmem:[%s1492_s14 + $0x58] sm:$0xff] %v837_v23  ;;  %v777_v24 = vpop.f32.mrb[28].mxu0  ;;  %v807_v25 = vpop.f32.mrb[20].mxu1 }
 0x2c3   : > { %v778_v26 = vadd.f32 %v777_v24, %v1482_v38  ;;  %v808_v27 = vadd.f32 %v807_v25, %v1482_v38  ;;  %v779_v28 = vpop.f32.mrb[29].mxu0  ;;  %v809_v29 = vpop.f32.mrb[21].mxu1 }
 0x2c4   : > { %v780_v30 = vadd.f32 %v779_v28, %v1484_v40  ;;  %v810_v31 = vadd.f32 %v809_v29, %v1484_v40  ;;  %v781_v32 = vpop.f32.mrb[30].mxu0  ;;  %v811_v33 = vpop.f32.mrb[22].mxu1 }
 0x2c5   : > { %v838_v34 = vmax.f32 %v778_v26, 0.0  ;;  %v850_v35 = vmax.f32 %v808_v27, 0.0  ;;  %v782_v36 = vadd.f32 %v781_v32, %v1482_v38  ;;  %v812_v37 = vadd.f32 %v811_v33, %v1482_v38  ;;  %v783_v41 = vpop.f32.mrb[31].mxu0  ;;  %v813_v39 = vpop.f32.mrb[23].mxu1 }
 0x2c6   : > { %v839_v42 = vmax.f32 %v780_v30, 0.0  ;;  %v851_v43 = vmax.f32 %v810_v31, 0.0  ;;  %v784_v44 = vadd.f32 %v783_v41, %v1484_v40  ;;  %v814_v45 = vadd.f32 %v813_v39, %v1484_v40 }
 0x2c7   : > { %870 = vst [vmem:[%s1492_s14 + $0x60] sm:$0xff] %v838_v34  ;;  %882 = vst [vmem:[%s1492_s14 + $0xc0] sm:$0xff] %v850_v35  ;;  %v840_v46 = vmax.f32 %v782_v36, 0.0  ;;  %v852_v47 = vmax.f32 %v812_v37, 0.0 }
 0x2c8   : > { %871 = vst [vmem:[%s1492_s14 + $0x68] sm:$0xff] %v839_v42  ;;  %883 = vst [vmem:[%s1492_s14 + $0xc8] sm:$0xff] %v851_v43  ;;  %v841_v48 = vmax.f32 %v784_v44, 0.0  ;;  %v853_v49 = vmax.f32 %v814_v45, 0.0 }
 0x2c9   : > { %872 = vst [vmem:[%s1492_s14 + $0x70] sm:$0xff] %v840_v46  ;;  %884 = vst [vmem:[%s1492_s14 + $0xd0] sm:$0xff] %v852_v47 }
 0x2ca   : > { %873 = vst [vmem:[%s1492_s14 + $0x78] sm:$0xff] %v841_v48  ;;  %885 = vst [vmem:[%s1492_s14 + $0xd8] sm:$0xff] %v853_v49  ;;  %v787_v50 = vpop.f32.mrb[32].mxu0  ;;  %v817_v51 = vpop.f32.mrb[24].mxu1 }
 0x2cb   : > { %v788_v52 = vadd.f32 %v787_v50, %v1482_v38  ;;  %v818_v53 = vadd.f32 %v817_v51, %v1482_v38  ;;  %v789_v54 = vpop.f32.mrb[33].mxu0  ;;  %v819_v55 = vpop.f32.mrb[25].mxu1 }
 0x2cc   : > { %v790_v56 = vadd.f32 %v789_v54, %v1484_v40  ;;  %v820_v57 = vadd.f32 %v819_v55, %v1484_v40  ;;  %v791_v58 = vpop.f32.mrb[34].mxu0  ;;  %v821_v59 = vpop.f32.mrb[26].mxu1 }
 0x2cd   : > { %v842_v60 = vmax.f32 %v788_v52, 0.0  ;;  %v854_v61 = vmax.f32 %v818_v53, 0.0  ;;  %v792_v62 = vadd.f32 %v791_v58, %v1482_v38  ;;  %v822_v63 = vadd.f32 %v821_v59, %v1482_v38  ;;  %v793_v0 = vpop.f32.mrb[35].mxu0  ;;  %v823_v1 = vpop.f32.mrb[27].mxu1 }
 0x2ce   : > { %v843_v2 = vmax.f32 %v790_v56, 0.0  ;;  %v855_v3 = vmax.f32 %v820_v57, 0.0  ;;  %v794_v4 = vadd.f32 %v793_v0, %v1484_v40  ;;  %v824_v5 = vadd.f32 %v823_v1, %v1484_v40 }
 0x2cf   : > { %874 = vst [vmem:[%s1492_s14 + $0x80] sm:$0xff] %v842_v60  ;;  %886 = vst [vmem:[%s1492_s14 + $0xe0] sm:$0xff] %v854_v61  ;;  %v844_v6 = vmax.f32 %v792_v62, 0.0  ;;  %v856_v7 = vmax.f32 %v822_v63, 0.0 }
 0x2d0   : > { %875 = vst [vmem:[%s1492_s14 + $0x88] sm:$0xff] %v843_v2  ;;  %887 = vst [vmem:[%s1492_s14 + $0xe8] sm:$0xff] %v855_v3  ;;  %v845_v38 = vmax.f32 %v794_v4, 0.0  ;;  %v857_v8 = vmax.f32 %v824_v5, 0.0 }
 0x2d1   : > { %876 = vst [vmem:[%s1492_s14 + $0x90] sm:$0xff] %v844_v6  ;;  %888 = vst [vmem:[%s1492_s14 + $0xf0] sm:$0xff] %v856_v7 }
 0x2d2   : > { %877 = vst [vmem:[%s1492_s14 + $0x98] sm:$0xff] %v845_v38  ;;  %889 = vst [vmem:[%s1492_s14 + $0xf8] sm:$0xff] %v857_v8 }
 0x2d3   : > { %1189 = shalt.err (!%p1186_p3)
}
 0x2d4   : > { %s1190_s8 = scalar_lea.hbm %s1553_s23, 4096  ;;  %s1194_s11 = scalar_lea.hbm %s1611_s5, 8192 }
 0x2d5   : > { %p1191_p4 = scmp.ne.s32.totalorder %s1553_s23, %s1190_s8  ;;  %p1195_p9 = scmp.lt.u32.totalorder %s1553_s23, %s1611_s5 }
 0x2d6   : > { %p1196_p10 = scmp.lt.u32.totalorder %s1194_s11, %s1190_s8  ;;  %p1198_p12 = scmp.lt.u32.totalorder %s1190_s8, %s1553_s23 }
 0x2d7   : > { %p1192_p7 = pnand %p1191_p4, %p1312_p5 }
 0x2d8   : > { %p1197_p11 = por %p1196_p10, %p1195_p9 }
 0x2d9   : > { %p1193_p8 = pneg %p1192_p7 }
 0x2da   : > { %p1199_p13 = por %p1198_p12, %p1197_p11 }
 0x2dc   : > { %p1200_p0 = pnand %p1199_p13, %p1193_p8 }
 0x2de   : > { %1203 = shalt.err (!%p1200_p0)
}
 0x2df   : > { %s1242_s14 = smov 256   ;;  %s1243_s15 = smov 16  }
 0x2e0   : > { %1104 = dma.vmem_to_hbm [thread:$0]  (%p1312_p5), %s1555_s16, 4096, %s1553_s23, %s1565_s25, %s1242_s14, %s1242_s14, %s1243_s15  }
 0x2e1 PF: > { %p1110_p1 = scmp.ge.s32.totalorder %s1238_s21, 2  ;;  %s920_s22 = sand.u32 1, %s1226_s18  }
 0x2e2   : > { %s921_s17 = scalar_lea.sflag [#allocation3], %s920_s22 }
 0x2e3   : > { %p1107_p2 = pnand %p1110_p1, %p1316_p6 }
 0x2e5   : > { %1221 = dma.done.wait (!%p1107_p2), %s921_s17, 4096  }
 0x2e6   : > { %1223 = vsyncadd (!%p1107_p2), %s921_s17, 4294963200  ;;  %p15_p3 = scmp.ge.s32.totalorder %s1299_s24, 4   ;;  %s1614_s18 = smov %s1230_s19 }
 0x2e7   : > { %s1615_s19 = smov %s1234_s20  ;;  %s1616_s20 = smov %s1310_s27 }
 0x2e8   : > { %s1617_s21 = smov %s1299_s24  ;;  %17 = sbr.rel (!%p15_p3) target bundleno = 3 (0x3), region = 75 }
 0x2ef   :  { %926 = vsyncpa [#allocation3], 1 }
 0x2f0   :  { %928 = vsyncpa [#allocation3 + $0x1], 1 }

</bundles_post_ra>
